<compile_context>
chip_gen: v7x
topology: tpu7x:2x2x1
jax: 0.10.0
libtpu: 0.0.40
codegen_flags: <defaults>
</compile_context>

<pallas_src>
import jax
import jax.numpy as jnp
from jax.experimental import pallas as pl
from jax.experimental.pallas import tpu as pltpu


def decoder_kernel(xr_ref, w1_ref, b1_ref, w2_ref, b2_ref, o_ref):
    # xr_ref: (tb, 40)  f32 VMEM  latent replicated 4x along lanes (col l*10+i = x[b,i])
    # w1_ref: (1, 40)   f32 VMEM  Linear(1,4) weight replicated (col l*10+i = w1[l])
    # b1_ref: (1, 40)   f32 VMEM  Linear(1,4) bias replicated
    # w2_ref: (40, 320) f32 VMEM  block-diagonal fused Conv1d weight
    # b2_ref: (1, 320)  f32 VMEM  Conv1d bias repeated per length position
    # o_ref:  (tb, 320)     VMEM  output, col c*4+l = channel c at length l
    y = xr_ref[...] * w1_ref[...] + b1_ref[...]            # Linear(1,4)  (VPU)
    y = jnp.where(y > 0, y, 0.2 * y)                        # LeakyReLU(0.2)
    # Conv1d(10, 80, k=1) over all 4 length positions as a single MXU matmul.
    z = jnp.dot(y, w2_ref[...], preferred_element_type=jnp.float32)
    z = z + b2_ref[...]                                     # bias hoisted: one broadcast
    o_ref[...] = jnp.maximum(z, 0.0).astype(o_ref.dtype)    # ReLU (+ optional bf16 cast)


def prepare_params(w1, b1, w2, b2):
    """One-time preprocessing of torch-layout parameters (do NOT redo per call).

    w1: (4, 1) Linear weight, b1: (4,), w2: (80, 10, 1) Conv1d weight, b2: (80,).
    """
    w1 = jnp.asarray(w1, jnp.float32).reshape(4)
    b1 = jnp.asarray(b1, jnp.float32).reshape(4)
    w2m = jnp.asarray(w2, jnp.float32)[:, :, 0]             # (80, 10)
    b2 = jnp.asarray(b2, jnp.float32).reshape(80)
    # Block-diagonal fused conv weight (pure elementwise build — exact f32):
    #   w2f[l*10 + i, c*4 + l2] = w2m[c, i] if l == l2 else 0
    eye = jnp.eye(4, dtype=jnp.float32)
    w2f = (w2m.T[None, :, :, None] * eye[:, None, None, :]).reshape(40, 320)
    return {
        "w1r": jnp.repeat(w1, 10).reshape(1, 40),            # col l*10+i = w1[l]
        "b1r": jnp.repeat(b1, 10).reshape(1, 40),
        "w2f": w2f,                                           # (40, 320)
        "b2f": jnp.repeat(b2, 4).reshape(1, 320),             # col c*4+l = b2[c]
    }


def _round_up(n, m):
    return ((n + m - 1) // m) * m


def decoder_forward_batched(x, params, *, block_b=2048, out_dtype=jnp.float32):
    """x: (B, 10, 1) or (B, 10) f32.  Returns (B, 80, 4) in out_dtype."""
    B = x.shape[0]
    xb = jnp.asarray(x, jnp.float32).reshape(B, 10)
    # Replicate the latent row 4x along lanes (col l*10+i = x[b, i]); tiny traffic
    # compared with the 1280 B/sample output, and it removes any in-kernel concat.
    xr = jnp.tile(xb, (1, 4))                                 # (B, 40)

    tb = min(block_b, _round_up(B, 8))                        # batch tile (multiple of 8)
    tb = min(tb, 8192)                                        # VMEM footprint cap (v7x: 64 MiB phys)
    Bp = _round_up(B, tb)
    if Bp != B:
        # Padded rows (zeros) flow through affine/LeakyReLU/matmul/ReLU and are
        # sliced off below — wasted bandwidth only; do NOT remove the [:B] slice.
        xr = jnp.pad(xr, ((0, Bp - B), (0, 0)))
    grid = (Bp // tb,)

    out_itemsize = jnp.dtype(out_dtype).itemsize
    # Double-buffered, lane-padded VMEM footprint (input 40->128, output 320->384 lanes).
    vmem_est = 2 * tb * 128 * 4 + 2 * tb * 384 * out_itemsize + (40 * 384 + 3 * 128) * 4
    compiler_kwargs = dict(dimension_semantics=("parallel",))
    if vmem_est > (14 << 20):   # above v5e's 16 MiB default scoped limit -> raise it
        compiler_kwargs["vmem_limit_bytes"] = int(min(vmem_est + (4 << 20), 48 << 20))

    # Advisory cost hint for XLA scheduling.
    flops = Bp * (4 * 40 + 2 * 40 * 320 + 2 * 320)
    bytes_accessed = 4 * (Bp * 40 + 40 + 40 + 40 * 320 + 320) + out_itemsize * Bp * 320

    out = pl.pallas_call(
        decoder_kernel,
        out_shape=jax.ShapeDtypeStruct((Bp, 320), out_dtype),
        grid=grid,
        in_specs=[
            pl.BlockSpec((tb, 40), lambda b: (b, 0)),          # replicated latent tile
            pl.BlockSpec((1, 40), lambda b: (0, 0)),           # w1 replicated (resident)
            pl.BlockSpec((1, 40), lambda b: (0, 0)),           # b1 replicated (resident)
            pl.BlockSpec((40, 320), lambda b: (0, 0)),         # fused conv weight (resident)
            pl.BlockSpec((1, 320), lambda b: (0, 0)),          # fused conv bias (resident)
        ],
        out_specs=pl.BlockSpec((tb, 320), lambda b: (b, 0)),    # lane-dense fused output
        compiler_params=pltpu.CompilerParams(**compiler_kwargs),
        cost_estimate=pl.CostEstimate(
            flops=int(flops), transcendentals=0, bytes_accessed=int(bytes_accessed)),
    )(xr, params["w1r"], params["b1r"], params["w2f"], params["b2f"])

    if Bp != B:
        out = out[:B]
    # (B, 320) -> (B, 80, 4): row-major metadata reshape; no HBM transpose.
    return out.reshape(B, 80, 4)


def decoder_forward(x, params):
    """Exact torch Decoder.forward semantics: x (10, 1) -> (1, 80, 4).

    Note: at B=1 the pallas_call launch overhead dominates the ~26 KFLOP of work;
    callers that generate many samples should use decoder_forward_batched directly.
    """
    return decoder_forward_batched(x.reshape(1, 10, 1), params)


def _reference(x, w1, b1, w2, b2):
    # Pure-JAX, purely elementwise f32 reference (no matmul-precision ambiguity),
    # matching torch semantics exactly for a single sample x (10, 1).
    y = x[:, 0:1] * w1[:, 0][None, :] + b1[None, :]           # Linear(1, 4) -> (10, 4)
    y = jnp.where(y > 0, y, 0.2 * y)                          # LeakyReLU(0.2)
    y = y.reshape(1, 10, 4)                                   # (N, C_in, L)
    w2m = w2[:, :, 0]                                         # (80, 10)
    z = jnp.sum(w2m[None, :, :, None] * y[:, None, :, :], axis=2) + b2[None, :, None]
    return jnp.maximum(z, 0.0)                                # (1, 80, 4)


if __name__ == "__main__":
    key = jax.random.PRNGKey(0)
    k_x, k_w1, k_b1, k_w2, k_b2, k_xb = jax.random.split(key, 6)

    # Input implied by forward(): 10 rows of a single latent scalar each.
    x = jax.random.normal(k_x, (10, 1), dtype=jnp.float32)

    # Deterministic synthetic parameters (shapes from nn.Linear(1,4) / nn.Conv1d(10,80,1)).
    w1 = jax.random.normal(k_w1, (4, 1), dtype=jnp.float32) * 0.5
    b1 = jax.random.normal(k_b1, (4,), dtype=jnp.float32) * 0.1
    w2 = jax.random.normal(k_w2, (80, 10, 1), dtype=jnp.float32) * 0.1
    b2 = jax.random.normal(k_b2, (80,), dtype=jnp.float32) * 0.1

    params = prepare_params(w1, b1, w2, b2)   # one-time weight preprocessing

    # Tolerance covers worst-case bf16 MXU passes for the in-kernel f32 dot
    # (typically the Mosaic f32 matmul is far more accurate than this).
    ATOL = RTOL = 2e-3

    # 1) Single-sample forward, matching torch Decoder.forward exactly.
    out = jax.block_until_ready(decoder_forward(x, params))
    ref = _reference(x, w1, b1, w2, b2)
    assert out.shape == (1, 80, 4)
    assert jnp.allclose(out, ref, atol=ATOL, rtol=RTOL)

    # 2) Batched path (typical SMOTE generation); B=5 exercises batch padding.
    B = 5
    xb = jax.random.normal(k_xb, (B, 10, 1), dtype=jnp.float32)
    outb = jax.block_until_ready(decoder_forward_batched(xb, params))
    refb = jnp.stack([_reference(xb[i], w1, b1, w2, b2)[0] for i in range(B)])
    assert outb.shape == (B, 80, 4)
    assert jnp.allclose(outb, refb, atol=ATOL, rtol=RTOL)

    print("KERNEL_OK")
</pallas_src>

<mosaic_0001>
module attributes {stable_mosaic.version = 11 : i64} {
  func.func @decoder_kernel(%arg0: i32, %arg1: memref<8x40xf32, #tpu.memory_space<vmem>>, %arg2: memref<1x40xf32, #tpu.memory_space<vmem>>, %arg3: memref<1x40xf32, #tpu.memory_space<vmem>>, %arg4: memref<40x320xf32, #tpu.memory_space<vmem>>, %arg5: memref<1x320xf32, #tpu.memory_space<vmem>>, %arg6: memref<8x320xf32, #tpu.memory_space<vmem>>) attributes {dimension_semantics = [#tpu.dimension_semantics<parallel>], iteration_bounds = array<i64: 1>, scalar_prefetch = 0 : i64, scratch_operands = 0 : i64, tpu.core_type = #tpu.core_type<tc>, window_params = [{transform_indices = @transform_0, window_bounds = array<i64: 8, 40>}, {pipeline_mode = #tpu.pipeline_mode<synchronous>, transform_indices = @transform_1, window_bounds = array<i64: 1, 40>}, {pipeline_mode = #tpu.pipeline_mode<synchronous>, transform_indices = @transform_2, window_bounds = array<i64: 1, 40>}, {pipeline_mode = #tpu.pipeline_mode<synchronous>, transform_indices = @transform_3, window_bounds = array<i64: 40, 320>}, {pipeline_mode = #tpu.pipeline_mode<synchronous>, transform_indices = @transform_4, window_bounds = array<i64: 1, 320>}, {transform_indices = @transform_5, window_bounds = array<i64: 8, 320>}]} {
    %c0 = arith.constant 0 : index
    %c0_0 = arith.constant 0 : index
    %0 = vector.load %arg1[%c0, %c0_0] : memref<8x40xf32, #tpu.memory_space<vmem>>, vector<8x40xf32>
    %c0_1 = arith.constant 0 : index
    %c0_2 = arith.constant 0 : index
    %1 = vector.load %arg2[%c0_1, %c0_2] : memref<1x40xf32, #tpu.memory_space<vmem>>, vector<1x40xf32>
    %2 = vector.broadcast %1 : vector<1x40xf32> to vector<8x40xf32>
    %3 = arith.mulf %0, %2 : vector<8x40xf32>
    %c0_3 = arith.constant 0 : index
    %c0_4 = arith.constant 0 : index
    %4 = vector.load %arg3[%c0_3, %c0_4] : memref<1x40xf32, #tpu.memory_space<vmem>>, vector<1x40xf32>
    %5 = vector.broadcast %4 : vector<1x40xf32> to vector<8x40xf32>
    %6 = arith.addf %3, %5 : vector<8x40xf32>
    %cst = arith.constant 0.000000e+00 : f32
    %7 = vector.broadcast %cst : f32 to vector<8x40xf32>
    %8 = arith.cmpf ogt, %6, %7 : vector<8x40xf32>
    %cst_5 = arith.constant 2.000000e-01 : f32
    %9 = vector.broadcast %cst_5 : f32 to vector<8x40xf32>
    %10 = arith.mulf %9, %6 : vector<8x40xf32>
    %11 = arith.select %8, %6, %10 : vector<8x40xi1>, vector<8x40xf32>
    %c0_6 = arith.constant 0 : index
    %c0_7 = arith.constant 0 : index
    %12 = vector.load %arg4[%c0_6, %c0_7] : memref<40x320xf32, #tpu.memory_space<vmem>>, vector<40x320xf32>
    %cst_8 = arith.constant dense<0.000000e+00> : vector<8x320xf32>
    %13 = tpu.matmul %11, %12, %cst_8 {dimension_numbers = #tpu.dot_dimension_numbers<[1], [0], [0], [1], [0, 0, 1, 1], [], []>} : vector<8x40xf32>, vector<40x320xf32>, vector<8x320xf32> -> vector<8x320xf32>
    %c0_9 = arith.constant 0 : index
    %c0_10 = arith.constant 0 : index
    %14 = vector.load %arg5[%c0_9, %c0_10] : memref<1x320xf32, #tpu.memory_space<vmem>>, vector<1x320xf32>
    %15 = vector.broadcast %14 : vector<1x320xf32> to vector<8x320xf32>
    %16 = arith.addf %13, %15 : vector<8x320xf32>
    %cst_11 = arith.constant 0.000000e+00 : f32
    %17 = vector.broadcast %cst_11 : f32 to vector<8x320xf32>
    %18 = arith.maximumf %16, %17 : vector<8x320xf32>
    %c0_12 = arith.constant 0 : index
    %c0_13 = arith.constant 0 : index
    %19 = vector.load %arg6[%c0_12, %c0_13] : memref<8x320xf32, #tpu.memory_space<vmem>>, vector<8x320xf32>
    tpu.vector_store %arg6[%c0_12, %c0_13], %18 {strides = array<i32>} : memref<8x320xf32, #tpu.memory_space<vmem>>, vector<8x320xf32>,
    return
  }
  func.func @transform_0(%arg0: i32) -> (i32, i32) {
    %c0_i32 = arith.constant 0 : i32
    %c0_i32_0 = arith.constant 0 : i32
    return %arg0, %c0_i32 : i32, i32
  }
  func.func @transform_1(%arg0: i32) -> (i32, i32) {
    %c0_i32 = arith.constant 0 : i32
    %c0_i32_0 = arith.constant 0 : i32
    %c0_i32_1 = arith.constant 0 : i32
    return %c0_i32, %c0_i32_0 : i32, i32
  }
  func.func @transform_2(%arg0: i32) -> (i32, i32) {
    %c0_i32 = arith.constant 0 : i32
    %c0_i32_0 = arith.constant 0 : i32
    %c0_i32_1 = arith.constant 0 : i32
    return %c0_i32, %c0_i32_0 : i32, i32
  }
  func.func @transform_3(%arg0: i32) -> (i32, i32) {
    %c0_i32 = arith.constant 0 : i32
    %c0_i32_0 = arith.constant 0 : i32
    %c0_i32_1 = arith.constant 0 : i32
    return %c0_i32, %c0_i32_0 : i32, i32
  }
  func.func @transform_4(%arg0: i32) -> (i32, i32) {
    %c0_i32 = arith.constant 0 : i32
    %c0_i32_0 = arith.constant 0 : i32
    %c0_i32_1 = arith.constant 0 : i32
    return %c0_i32, %c0_i32_0 : i32, i32
  }
  func.func @transform_5(%arg0: i32) -> (i32, i32) {
    %c0_i32 = arith.constant 0 : i32
    %c0_i32_0 = arith.constant 0 : i32
    return %arg0, %c0_i32 : i32, i32
  }
}

</mosaic_0001>

<bundles_post_ra>
// kernel: tpu_custom_call.1
= control target key start
LH: loop header
LB: loop body
LE: loop exit
PB: predicated region body
PF: predicated region fallthrough
CT: control target
= control target key end

     0   :  { %10 = vsyncpa [#allocation3], 0  ;;  %s474_s0 = inlined_call_operand.hbm [shape: f32[8,40], index: 0, kind: input, shape index: {}]   ;;  %s475_s1 = inlined_call_operand.vmem [shape: f32[1,40], index: 1, kind: input, shape index: {}]   ;;  %s476_s2 = inlined_call_operand.vmem [shape: f32[1,40], index: 2, kind: input, shape index: {}]   ;;  %s477_s3 = inlined_call_operand.hbm [shape: f32[40,320], index: 3, kind: input, shape index: {}]   ;;  %s478_s4 = inlined_call_operand.vmem [shape: f32[1,320], index: 4, kind: input, shape index: {}]   ;;  %s479_s5 = inlined_call_operand.hbm [shape: f32[8,320], index: 5, kind: output, shape index: {}]  }
   0x1   :  { %11 = vsyncpa [#allocation6], 0 }
   0x2   :  { %12 = vsyncpa [#allocation4], 0  ;;  %s384_s18 = smov [#allocation2]   ;;  %s385_s20 = smov [#allocation5]  }
   0x3   :  { %s19_s19 = sshll.u32 %s384_s18, 4  ;;  %s32_s21 = sshll.u32 %s385_s20, 4  ;;  %s20_s19 = int_to_ptr.vmem [resolvable:$true] %s19_s19  ;;  %s422_s21 = int_to_ptr.vmem [resolvable:$true] %s32_s21 }
   0x4   :  { %s312_s24 = scalar_lea.hbm %s474_s0, 128 }
   0x5   :  { %p313_p0 = scmp.ne.s32.totalorder %s474_s0, %s312_s24  ;;  %p316_p1 = scmp.lt.u32.totalorder %s312_s24, %s474_s0 }
   0x7   :  { %p318_p2 = pnand %p316_p1, %p313_p0 }
   0x9   :  { %321 = shalt.err (!%p318_p2)
}
   0xa   :  { %s322_s29 = scalar_lea.vmem %s20_s19, 128  ;;  %p327_p4 = scmp.lt.s32.totalorder %s20_s19, %s20_s19 }
   0xb   :  { %p323_p3 = scmp.ne.s32.totalorder %s20_s19, %s322_s29  ;;  %p328_p5 = scmp.lt.s32.totalorder %s322_s29, %s322_s29 }
   0xd   :  { %p329_p6 = por %p328_p5, %p327_p4 }
   0xf   :  { %p330_p7 = pnand %p329_p6, %p323_p3 }
  0x11   :  { %333 = shalt.err (!%p330_p7)
}
  0x12   :  { %22 = dma.hbm_to_vmem [thread:$0]  %s474_s0, 128, %s20_s19, [#allocation3]  }
  0x13   :  { %s334_s9 = scalar_lea.hbm %s477_s3, 1920 }
  0x14   :  { %p335_p8 = scmp.ne.s32.totalorder %s477_s3, %s334_s9  ;;  %p338_p9 = scmp.lt.u32.totalorder %s334_s9, %s477_s3 }
  0x16   :  { %p340_p10 = pnand %p338_p9, %p335_p8 }
  0x18   :  { %343 = shalt.err (!%p340_p10)
}
  0x19   :  { %s344_s14 = scalar_lea.vmem %s422_s21, 1920  ;;  %p349_p12 = scmp.lt.s32.totalorder %s422_s21, %s422_s21 }
  0x1a   :  { %p345_p11 = scmp.ne.s32.totalorder %s422_s21, %s344_s14  ;;  %p350_p13 = scmp.lt.s32.totalorder %s344_s14, %s344_s14 }
  0x1c   :  { %p351_p0 = por %p350_p13, %p349_p12 }
  0x1e   :  { %p352_p1 = pnand %p351_p0, %p345_p11 }
  0x20   :  { %355 = shalt.err (!%p352_p1)
}
  0x21   :  { %s386_s0 = smov 384   ;;  %s387_s15 = smov 24  }
  0x22   :  { %38 = dma.hbm_to_vmem [thread:$0]  %s477_s3, 1920, %s422_s21, [#allocation6], %s386_s0, %s386_s0, %s387_s15  }
  0x23   :  { %378 = dma.done.wait [#allocation3], 128  }
  0x24   :  { %379 = vsyncadd [#allocation3], 4294967168 }
  0x25   :  { %380 = dma.done.wait [#allocation6], 1920  }
  0x26   :  { %381 = vsyncadd [#allocation6], 4294965376  ;;  %v388_v0 = vmov 0.0|0.0   ;;  %v389_v1 = vmov 0.0   ;;  %vm390_vm0 = vmmov 0   ;;  %v68_v2 = vld [vmem:[#allocation5 + $0x8] sm:$0xff]  ;;  %v84_v30 = vlaneseq }
  0x27   :  { %298 = vmatprep.subr.bf16.mxu1 %v388_v0  ;;  %167 = vmatprep.mubr.f32.mxu0 %v389_v1  ;;  %v71_v3 = vld [vmem:[#allocation5 + $0x20] sm:$0xff]  ;;  %v70_v6 = vld [vmem:[#allocation5 + $0x18] sm:$0xff]  ;;  %v69_v7 = vld [vmem:[#allocation5 + $0x10] sm:$0xff]  ;;  %vm99_vm2 = vcmask 326656   ;;  %s391_s21 = smov [#allocation7]   ;;  %vm249_vm3 = vcmask 523264  }
  0x28   :  { %287 = vmatprep.mubr.msk.f32.mxu1 %vm390_vm0, %v389_v1  ;;  %v67_v4 = vld [vmem:[#allocation5] sm:$0xff]  ;;  %v290_v5 = vpack.c.bf16 %v71_v3, %v68_v2  ;;  %v72_v8 = vld [vmem:[#allocation5 + $0x28] sm:$0xff]  ;;  %v74_v11 = vld [vmem:[#allocation5 + $0x38] sm:$0xff]  ;;  %v85_v31 = vshrl.u32 %v84_v30, 7  ;;  %s257_s22 = sshll.u32 %s391_s21, 4  ;;  %s258_s22 = int_to_ptr.vmem [resolvable:$true] %s257_s22 }
  0x29   :  { %v292_v9 = vpack.c.bf16 %v70_v6, %v67_v4  ;;  %v299_v10 = vpack.c.bf16 %v72_v8, %v69_v7  ;;  %v77_v12 = vld [vmem:[#allocation5 + $0x50] sm:$0xff]  ;;  %v76_v15 = vld [vmem:[#allocation5 + $0x48] sm:$0xff]  ;;  %v75_v16 = vld [vmem:[#allocation5 + $0x40] sm:$0xff]  ;;  %p361_p3 = scmp.lt.s32.totalorder %s258_s22, %s258_s22 }
  0x2a   :  { %v73_v13 = vld [vmem:[#allocation5 + $0x30] sm:$0xff]  ;;  %291 = vmatprep.subr.bf16.mxu0 %v290_v5  ;;  %v294_v14 = vpack.c.bf16 %v77_v12, %v74_v11  ;;  %v78_v17 = vld [vmem:[#allocation5 + $0x58] sm:$0xff]  ;;  %v80_v23 = vld [vmem:[#allocation5 + $0x68] sm:$0xff]  ;;  %v86_v32 = vsub.s32 0, %v85_v31  ;;  %v94_v33 = vsub.s32 2, %v85_v31  ;;  %v90_v35 = vsub.s32 1, %v85_v31 }
  0x2b   :  { %293 = vmatpush1.bf16.msra.mxu0 %v292_v9  ;;  %300 = vmatpush3.bf16.msra.mxu1 %v299_v10  ;;  %v296_v18 = vpack.c.bf16 %v76_v15, %v73_v13  ;;  %v302_v19 = vpack.c.bf16 %v78_v17, %v75_v16  ;;  %v47_v20 = vld [vmem:[#allocation2] sm:$0xff]  ;;  %v79_v26 = vld [vmem:[#allocation5 + $0x60] sm:$0xff]  ;;  %v81_v27 = vld [vmem:[#allocation5 + $0x70] sm:$0xff] }
  0x2c   :  { %295 = vmatprep.subr.bf16.mxu0 %v294_v14  ;;  %301 = vmatprep.subr.bf16.mxu1 %v388_v0  ;;  %v267_v21 = vld [vmem:[%s475_s1] ss:$0 sm:$0xff] }
  0x2d   :  { %v268_v22 = vld [vmem:[%s476_s2] ss:$0 sm:$0xff]  ;;  %v55_v24 = vmul.f32 %v267_v21, %v47_v20 }
  0x2e   :  { %v82_v34 = vld [vmem:[%s478_s4] sm:$0x7]  ;;  %s356_s4 = scalar_lea.vmem %s258_s22, 384 }
  0x2f   :  { %297 = vmatpush1.bf16.msra.mxu0 %v296_v18  ;;  %303 = vmatpush3.bf16.msra.mxu1 %v302_v19  ;;  %v63_v25 = vadd.f32 %v268_v22, %v55_v24  ;;  %v87_v36 = vrot.slane %v82_v34, %v86_v32  ;;  %v95_v37 = vrot.slane %v82_v34, %v94_v33  ;;  %p357_p2 = scmp.ne.s32.totalorder %s258_s22, %s356_s4  ;;  %p362_p4 = scmp.lt.s32.totalorder %s356_s4, %s356_s4 }
  0x30   :  { %111 = vmatprep.subr.mxu0 %v80_v23  ;;  %285 = vmatprep.subr.mxu1 %v389_v1  ;;  %v91_v38 = vrot.slane %v82_v34, %v90_v35 }
  0x31   :  { %vm64_vm1 = vcmp.gt.f32.partialorder %v63_v25, 0.0  ;;  %v65_v28 = vmul.f32 0.2, %v63_v25  ;;  %p363_p5 = por %p362_p4, %p361_p3 }
  0x33   :  { %112 = vmatpush1.msra.mxu0 %v79_v26  ;;  %286 = vmatpush3.msra.mxu1 %v81_v27  ;;  %v66_v29 = vsel %vm64_vm1, %v63_v25, %v65_v28  ;;  %p364_p6 = pnand %p363_p5, %p357_p2 }
  0x34   :  { %269 = vmatmul.mubr.msk.f32.vlgmr.msra.gmra.mrb[0].mxu0 %vm99_vm2, %v66_v29  ;;  %288 = vmatmul.mubr.msk.f32.vlgmr.msra.gmra.mrb[0].mxu1 %vm99_vm2, %v66_v29 }
 0x107   :  { %v169_v39 = vpop.f32.mrb[0].mxu0  ;;  %v240_v40 = vpop.f32.mrb[0].mxu1 }
 0x108   :  { %v170_v41 = vadd.f32 %v169_v39, %v87_v36  ;;  %v241_v42 = vadd.f32 %v240_v40, %v95_v37  ;;  %v171_v43 = vpop.f32.mrb[1].mxu0  ;;  %v289_v44 = vpop.f32.mrb[1].mxu1 }
 0x109   :  { %v172_v45 = vadd.f32 %v171_v43, %v91_v38 }
 0x10a   :  { %v244_v46 = vmax.f32 %v170_v41, 0.0  ;;  %v246_v47 = vmax.f32 %v241_v42, 0.0 }
 0x10b   :  { %v245_v48 = vmax.f32 %v172_v45, 0.0 }
 0x10c   :  { %247 = vst [vmem:[#allocation7] sm:$0xff] %v244_v46  ;;  %250 = vst.msk [vmem:[#allocation7 + $0x10] sm:$0xff] %vm249_vm3, %v246_v47 }
 0x10d   :  { %248 = vst [vmem:[#allocation7 + $0x8] sm:$0xff] %v245_v48 }
 0x10e   :  { %367 = shalt.err (!%p364_p6)
}
 0x10f   :  { %s368_s25 = scalar_lea.hbm %s479_s5, 384 }
 0x110   :  { %p369_p7 = scmp.ne.s32.totalorder %s479_s5, %s368_s25  ;;  %p372_p8 = scmp.lt.u32.totalorder %s368_s25, %s479_s5 }
 0x112   :  { %p374_p9 = pnand %p372_p8, %p369_p7 }
 0x114   :  { %377 = shalt.err (!%p374_p9)
}
 0x115   :  { %260 = dma.vmem_to_hbm [thread:$0]  %s258_s22, 384, %s479_s5, [#allocation4]  }
 0x116   :  { %382 = dma.done.wait [#allocation4], 384  }
 0x117   :  { %383 = vsyncadd [#allocation4], 4294966912 }
 0x118   :  { %264 = vsyncpa [#allocation3], 1 }
 0x119   :  { %265 = vsyncpa [#allocation6], 1 }
 0x11a   :  { %266 = vsyncpa [#allocation4], 1 }

</bundles_post_ra>
